<compile_context>
chip_gen: v6e
topology: v6e:2x2x1
jax: 0.10.0
libtpu: 0.0.40
codegen_flags: <defaults>
</compile_context>

<pallas_src>
import functools

import jax
import jax.numpy as jnp
from jax.experimental import pallas as pl
from jax.experimental.pallas import tpu as pltpu


def _residual_block_kernel(inv_count, graph_ref, init_ref, edge_ref, o_ref):
    # graph_ref: (TB, TS); init_ref: (TB, M1, TS); edge_ref: (TB, M2, TS)
    s_init = jnp.sum(init_ref[...].astype(jnp.float32), axis=1)   # XLU sublane reduce
    s_edge = jnp.sum(edge_ref[...].astype(jnp.float32), axis=1)
    residual = (s_init + s_edge) * inv_count                      # mean of virtual concat
    out = jnp.maximum(graph_ref[...].astype(jnp.float32) + residual, 0.0)
    o_ref[...] = out.astype(o_ref.dtype)


def _round_up(x, m):
    return (x + m - 1) // m * m


def _vmem_capacity_bytes():
    try:
        cap = int(pltpu.get_tpu_info().vmem_capacity_bytes)
        if cap > 0:
            return cap
    except Exception:
        pass
    return 64 << 20  # conservative fallback: v7x per-TensorCore VMEM


def _pick_tiles(B8, M1, M2, S128, graph_isz, init_isz, edge_isz, out_isz, vmem_cap):
    # Feature-dim tile: full S when small; otherwise a lane-dense 128-multiple
    # block so the VMEM footprint is decoupled from S.
    if S128 <= 2048:
        ts = S128
    else:
        ts = S128
        for cand in (2048, 1024, 512, 256, 128):
            if S128 % cand == 0:
                ts = cand
                break

    # Batch tile: biggest multiple of 8 whose double-buffered slab fits ~40%
    # of per-core VMEM (headroom for compiler scratch; 64 MiB on v7x,
    # 128 MiB on v5e/v6e).
    budget = int(vmem_cap * 0.4)
    per_row = 2 * (ts * graph_isz + M1 * ts * init_isz + M2 * ts * edge_isz + ts * out_isz)
    tb = max(8, (budget // per_row // 8) * 8)
    tb = min(tb, B8)
    if B8 >= 16:
        # >= 2 batch steps so the "parallel" axis shards across v7x's two
        # TensorCores and pipelining overlaps; rebalance to minimize padding.
        n_steps = max(2, pl.cdiv(B8, tb))
        tb = min(tb, _round_up(pl.cdiv(B8, n_steps), 8))
    return tb, ts


def residual_block(graph_out, init_input, edge_state, *, batch_tile=None, feat_tile=None):
    """graph_out: (B, S); init_input: (B, M1, S); edge_state: (B, M2, S) -> (B, S)."""
    B, S = graph_out.shape
    Bi, M1, Si = init_input.shape
    Be, M2, Se = edge_state.shape
    assert Bi == B and Be == B and Si == S and Se == S

    out_dtype = graph_out.dtype
    vmem_cap = _vmem_capacity_bytes()

    B8 = _round_up(B, 8)
    S128 = _round_up(S, 128)   # keep output stores lane-dense (no masked vst)

    tb, ts = _pick_tiles(
        B8, M1, M2, S128,
        graph_out.dtype.itemsize, init_input.dtype.itemsize,
        edge_state.dtype.itemsize, jnp.dtype(out_dtype).itemsize,
        vmem_cap)
    if batch_tile is not None:
        tb = _round_up(int(batch_tile), 8)
    if feat_tile is not None:
        ts = _round_up(int(feat_tile), 128)
    assert S128 % ts == 0, "feature tile must divide padded feature dim"

    grid_b = pl.cdiv(B8, tb)
    grid_s = S128 // ts
    B_pad = grid_b * tb

    def _pad(x):
        pads = ([(0, B_pad - x.shape[0])]
                + [(0, 0)] * (x.ndim - 2)
                + [(0, S128 - x.shape[-1])])
        if any(p != (0, 0) for p in pads):
            x = jnp.pad(x, pads)
        return x

    graph_p = _pad(graph_out)
    init_p = _pad(init_input)
    edge_p = _pad(edge_state)

    inv_count = 1.0 / float(M1 + M2)
    kernel = functools.partial(_residual_block_kernel, inv_count)

    # Double-buffered per-step footprint; raise the scoped VMEM limit to cover
    # it (v5e default is only 16 MiB) while staying well inside v7x's 64 MiB.
    need = 2 * (tb * ts * graph_p.dtype.itemsize
                + tb * M1 * ts * init_p.dtype.itemsize
                + tb * M2 * ts * edge_p.dtype.itemsize
                + tb * ts * jnp.dtype(out_dtype).itemsize)
    vmem_limit = int(min(vmem_cap * 3 // 4, max(need + (4 << 20), 32 << 20)))

    out = pl.pallas_call(
        kernel,
        out_shape=jax.ShapeDtypeStruct((B_pad, S128), out_dtype),
        grid_spec=pltpu.PrefetchScalarGridSpec(
            num_scalar_prefetch=0,
            grid=(grid_b, grid_s),
            in_specs=[
                pl.BlockSpec((tb, ts), lambda b, s: (b, s)),          # graph_out tile
                pl.BlockSpec((tb, M1, ts), lambda b, s: (b, 0, s)),   # init_input tile
                pl.BlockSpec((tb, M2, ts), lambda b, s: (b, 0, s)),   # edge_state tile
            ],
            out_specs=pl.BlockSpec((tb, ts), lambda b, s: (b, s)),
        ),
        compiler_params=pltpu.CompilerParams(
            dimension_semantics=("parallel", "parallel"),
            vmem_limit_bytes=vmem_limit,
        ),
    )(graph_p, init_p, edge_p)

    if B_pad != B or S128 != S:
        out = out[:B, :S]
    return out


def reference(graph_out, init_input, edge_state):
    """Pure-JAX mirror of the PyTorch forward, for correctness checking."""
    feat_input = jnp.concatenate([init_input, edge_state], axis=1)
    residual = jnp.mean(feat_input, axis=1)
    return jax.nn.relu(graph_out + residual)


if __name__ == "__main__":
    key = jax.random.PRNGKey(0)

    # Case 1: aligned shapes, f32 (B multiple of 8, S multiple of 128).
    B, M1, M2, S = 8, 8, 8, 128
    kg, ki, ke, key = jax.random.split(key, 4)
    graph_out = jax.random.normal(kg, (B, S), jnp.float32)
    init_input = jax.random.normal(ki, (B, M1, S), jnp.float32)
    edge_state = jax.random.normal(ke, (B, M2, S), jnp.float32)
    y = jax.block_until_ready(residual_block(graph_out, init_input, edge_state))
    y_ref = reference(graph_out, init_input, edge_state)
    assert y.shape == (B, S)
    assert jnp.allclose(y, y_ref, atol=1e-5, rtol=1e-5), "f32 mismatch vs reference"

    # Case 2: ragged batch / feature dims + bf16 inputs (exercises wrapper
    # padding, the multi-step batch grid, and in-kernel f32 accumulation).
    B, M1, M2, S = 10, 5, 3, 96
    kg, ki, ke, key = jax.random.split(key, 4)
    graph_out = jax.random.normal(kg, (B, S), jnp.float32).astype(jnp.bfloat16)
    init_input = jax.random.normal(ki, (B, M1, S), jnp.float32).astype(jnp.bfloat16)
    edge_state = jax.random.normal(ke, (B, M2, S), jnp.float32).astype(jnp.bfloat16)
    y = jax.block_until_ready(residual_block(graph_out, init_input, edge_state))
    y_ref = reference(graph_out.astype(jnp.float32),
                      init_input.astype(jnp.float32),
                      edge_state.astype(jnp.float32))
    assert y.shape == (B, S) and y.dtype == jnp.bfloat16
    assert jnp.allclose(y.astype(jnp.float32), y_ref, atol=2e-2, rtol=2e-2), \
        "bf16 mismatch vs reference"

    print("KERNEL_OK")
</pallas_src>

<mosaic_0001>
module attributes {stable_mosaic.version = 11 : i64} {
  func.func @_residual_block_kernel(%arg0: i32, %arg1: i32, %arg2: memref<8x128xf32, #tpu.memory_space<vmem>>, %arg3: memref<8x8x128xf32, #tpu.memory_space<vmem>>, %arg4: memref<8x8x128xf32, #tpu.memory_space<vmem>>, %arg5: memref<8x128xf32, #tpu.memory_space<vmem>>) attributes {dimension_semantics = [#tpu.dimension_semantics<parallel>, #tpu.dimension_semantics<parallel>], iteration_bounds = array<i64: 1, 1>, scalar_prefetch = 0 : i64, scratch_operands = 0 : i64, tpu.core_type = #tpu.core_type<tc>, window_params = [{transform_indices = @transform_0, window_bounds = array<i64: 8, 128>}, {transform_indices = @transform_1, window_bounds = array<i64: 8, 8, 128>}, {transform_indices = @transform_2, window_bounds = array<i64: 8, 8, 128>}, {transform_indices = @transform_3, window_bounds = array<i64: 8, 128>}]} {
    %c0 = arith.constant 0 : index
    %c0_0 = arith.constant 0 : index
    %c0_1 = arith.constant 0 : index
    %0 = vector.load %arg3[%c0, %c0_0, %c0_1] : memref<8x8x128xf32, #tpu.memory_space<vmem>>, vector<8x8x128xf32>
    %cst = arith.constant dense<0.000000e+00> : vector<8x128xf32>
    %1 = vector.multi_reduction <add>, %0, %cst [1] : vector<8x8x128xf32> to vector<8x128xf32>
    %c0_2 = arith.constant 0 : index
    %c0_3 = arith.constant 0 : index
    %c0_4 = arith.constant 0 : index
    %2 = vector.load %arg4[%c0_2, %c0_3, %c0_4] : memref<8x8x128xf32, #tpu.memory_space<vmem>>, vector<8x8x128xf32>
    %cst_5 = arith.constant dense<0.000000e+00> : vector<8x128xf32>
    %3 = vector.multi_reduction <add>, %2, %cst_5 [1] : vector<8x8x128xf32> to vector<8x128xf32>
    %4 = arith.addf %1, %3 : vector<8x128xf32>
    %cst_6 = arith.constant 6.250000e-02 : f32
    %5 = vector.broadcast %cst_6 : f32 to vector<8x128xf32>
    %6 = arith.mulf %4, %5 : vector<8x128xf32>
    %c0_7 = arith.constant 0 : index
    %c0_8 = arith.constant 0 : index
    %7 = vector.load %arg2[%c0_7, %c0_8] : memref<8x128xf32, #tpu.memory_space<vmem>>, vector<8x128xf32>
    %8 = arith.addf %7, %6 : vector<8x128xf32>
    %cst_9 = arith.constant 0.000000e+00 : f32
    %9 = vector.broadcast %cst_9 : f32 to vector<8x128xf32>
    %10 = arith.maximumf %8, %9 : vector<8x128xf32>
    %c0_10 = arith.constant 0 : index
    %c0_11 = arith.constant 0 : index
    %11 = vector.load %arg5[%c0_10, %c0_11] : memref<8x128xf32, #tpu.memory_space<vmem>>, vector<8x128xf32>
    tpu.vector_store %arg5[%c0_10, %c0_11], %10 {strides = array<i32>} : memref<8x128xf32, #tpu.memory_space<vmem>>, vector<8x128xf32>,
    return
  }
  func.func @transform_0(%arg0: i32, %arg1: i32) -> (i32, i32) {
    %c0_i32 = arith.constant 0 : i32
    return %arg0, %arg1 : i32, i32
  }
  func.func @transform_1(%arg0: i32, %arg1: i32) -> (i32, i32, i32) {
    %c0_i32 = arith.constant 0 : i32
    %c0_i32_0 = arith.constant 0 : i32
    return %arg0, %c0_i32, %arg1 : i32, i32, i32
  }
  func.func @transform_2(%arg0: i32, %arg1: i32) -> (i32, i32, i32) {
    %c0_i32 = arith.constant 0 : i32
    %c0_i32_0 = arith.constant 0 : i32
    return %arg0, %c0_i32, %arg1 : i32, i32, i32
  }
  func.func @transform_3(%arg0: i32, %arg1: i32) -> (i32, i32) {
    %c0_i32 = arith.constant 0 : i32
    return %arg0, %arg1 : i32, i32
  }
}

</mosaic_0001>

<bundles_post_ra>
// kernel: tpu_custom_call.1
= control target key start
LH: loop header
LB: loop body
LE: loop exit
PB: predicated region body
PF: predicated region fallthrough
CT: control target
= control target key end

     0   :  { %8 = vsyncpa [#allocation3], 0  ;;  %s366_s0 = inlined_call_operand.hbm [shape: f32[8,128], index: 0, kind: input, shape index: {}]   ;;  %s367_s1 = inlined_call_operand.hbm [shape: f32[8,8,128], index: 1, kind: input, shape index: {}]   ;;  %s368_s2 = inlined_call_operand.hbm [shape: f32[8,8,128], index: 2, kind: input, shape index: {}]   ;;  %s369_s3 = inlined_call_operand.hbm [shape: f32[8,128], index: 3, kind: output, shape index: {}]  }
   0x1   :  { %9 = vsyncpa [#allocation6], 0 }
   0x2   :  { %10 = vsyncpa [#allocation4], 0  ;;  %s317_s12 = smov [#allocation5]  }
   0x3   :  { %s26_s13 = sshll.u32 %s317_s12, 4  ;;  %s27_s13 = int_to_ptr.vmem [resolvable:$true] %s26_s13 }
   0x4   :  { %s239_s14 = scalar_lea.vmem %s27_s13, 1024  ;;  %p244_p1 = scmp.lt.s32.totalorder %s27_s13, %s27_s13 }
   0x5   :  { %p240_p0 = scmp.ne.s32.totalorder %s27_s13, %s239_s14  ;;  %p245_p2 = scmp.lt.s32.totalorder %s239_s14, %s239_s14 }
   0x7   :  { %p246_p3 = por %p245_p2, %p244_p1 }
   0x9   :  { %p247_p4 = pnand %p246_p3, %p240_p0 }
   0xb   :  { %250 = shalt.err (!%p247_p4)
}
   0xc   :  { %s318_s15 = smov 128   ;;  %s319_s16 = smov 8  }
   0xd   :  { %32 = dma.hbm_to_vmem [thread:$0]  %s367_s1, 1024, %s27_s13, [#allocation6], %s318_s15, %s318_s15, %s319_s16  }
   0xe   :  { %s320_s19 = smov [#allocation2]   ;;  %s321_s21 = smov [#allocation7]  }
   0xf   :  { %s17_s20 = sshll.u32 %s320_s19, 4  ;;  %s38_s22 = sshll.u32 %s321_s21, 4  ;;  %s18_s20 = int_to_ptr.vmem [resolvable:$true] %s17_s20  ;;  %s39_s22 = int_to_ptr.vmem [resolvable:$true] %s38_s22 }
  0x10   :  { %s259_s23 = scalar_lea.vmem %s18_s20, 128  ;;  %p264_p6 = scmp.lt.s32.totalorder %s18_s20, %s18_s20 }
  0x11   :  { %p260_p5 = scmp.ne.s32.totalorder %s18_s20, %s259_s23  ;;  %p265_p7 = scmp.lt.s32.totalorder %s259_s23, %s259_s23 }
  0x13   :  { %p266_p8 = por %p265_p7, %p264_p6 }
  0x15   :  { %p267_p9 = pnand %p266_p8, %p260_p5 }
  0x17   :  { %270 = shalt.err (!%p267_p9)
}
  0x18   :  { %20 = dma.hbm_to_vmem [thread:$0]  %s366_s0, 128, %s18_s20, [#allocation3]  }
  0x19   :  { %s279_s26 = scalar_lea.vmem %s39_s22, 1024  ;;  %p284_p11 = scmp.lt.s32.totalorder %s39_s22, %s39_s22 }
  0x1a   :  { %p280_p10 = scmp.ne.s32.totalorder %s39_s22, %s279_s26  ;;  %p285_p12 = scmp.lt.s32.totalorder %s279_s26, %s279_s26 }
  0x1c   :  { %p286_p13 = por %p285_p12, %p284_p11 }
  0x1e   :  { %p287_p0 = pnand %p286_p13, %p280_p10 }
  0x20   :  { %290 = shalt.err (!%p287_p0)
}
  0x21   :  { %44 = dma.hbm_to_vmem [thread:$0]  %s368_s2, 1024, %s39_s22, [#allocation6], %s318_s15, %s318_s15, %s319_s16  }
  0x22   :  { %311 = dma.done.wait [#allocation3], 128  }
  0x23   :  { %312 = vsyncadd [#allocation3], 4294967168 }
  0x24   :  { %313 = dma.done.wait [#allocation6], 2048  }
  0x25   :  { %314 = vsyncadd [#allocation6], 4294965248  ;;  %v54_v0 = vld [vmem:[#allocation5] sm:$0xff]  ;;  %v55_v1 = vld [vmem:[#allocation5 + $0x8] sm:$0xff]  ;;  %vm191_vm0 = vcmask 1041409   ;;  %vm193_vm1 = vcmask 1042434  }
  0x26   :  { %v56_v2 = vld [vmem:[#allocation5 + $0x10] sm:$0xff]  ;;  %v57_v3 = vld [vmem:[#allocation5 + $0x18] sm:$0xff]  ;;  %v58_v4 = vld [vmem:[#allocation5 + $0x20] sm:$0xff]  ;;  %v62_v6 = vrot.slane %v54_v0, 4  ;;  %v68_v7 = vrot.slane %v55_v1, 4  ;;  %vm195_vm2 = vcmask 1043459  }
  0x27   :  { %v59_v5 = vld [vmem:[#allocation5 + $0x28] sm:$0xff]  ;;  %v74_v8 = vrot.slane %v56_v2, 4  ;;  %v60_v9 = vld [vmem:[#allocation5 + $0x30] sm:$0xff]  ;;  %v61_v10 = vld [vmem:[#allocation5 + $0x38] sm:$0xff]  ;;  %v80_v11 = vrot.slane %v57_v3, 4  ;;  %v86_v12 = vrot.slane %v58_v4, 4 }
  0x28   :  { %v92_v13 = vrot.slane %v59_v5, 4  ;;  %v63_v14 = vadd.f32 %v62_v6, %v54_v0  ;;  %v69_v15 = vadd.f32 %v68_v7, %v55_v1  ;;  %v98_v17 = vrot.slane %v60_v9, 4  ;;  %v110_v46 = vld [vmem:[#allocation7] sm:$0xff]  ;;  %v111_v47 = vld [vmem:[#allocation7 + $0x8] sm:$0xff]  ;;  %v112_v48 = vld [vmem:[#allocation7 + $0x10] sm:$0xff]  ;;  %s322_s0 = smov [#allocation8]  }
  0x29   :  { %v75_v16 = vadd.f32 %v74_v8, %v56_v2  ;;  %v81_v18 = vadd.f32 %v80_v11, %v57_v3  ;;  %v87_v19 = vadd.f32 %v86_v12, %v58_v4  ;;  %v104_v21 = vrot.slane %v61_v10, 4  ;;  %v113_v53 = vld [vmem:[#allocation7 + $0x18] sm:$0xff]  ;;  %v114_v54 = vld [vmem:[#allocation7 + $0x20] sm:$0xff]  ;;  %v115_v55 = vld [vmem:[#allocation7 + $0x28] sm:$0xff]  ;;  %s215_s2 = sshll.u32 %s322_s0, 4  ;;  %s216_s2 = int_to_ptr.vmem [resolvable:$true] %s215_s2 }
  0x2a   :  { %v93_v20 = vadd.f32 %v92_v13, %v59_v5  ;;  %v64_v22 = vrot.slane %v63_v14, 2  ;;  %v70_v23 = vrot.slane %v69_v15, 2  ;;  %v99_v25 = vadd.f32 %v98_v17, %v60_v9  ;;  %v116_v60 = vld [vmem:[#allocation7 + $0x30] sm:$0xff]  ;;  %v117_v62 = vld [vmem:[#allocation7 + $0x38] sm:$0xff]  ;;  %s291_s28 = scalar_lea.vmem %s216_s2, 128  ;;  %p296_p2 = scmp.lt.s32.totalorder %s216_s2, %s216_s2 }
  0x2b   :  { %v76_v24 = vrot.slane %v75_v16, 2  ;;  %v82_v26 = vrot.slane %v81_v18, 2  ;;  %v88_v27 = vrot.slane %v87_v19, 2  ;;  %v105_v29 = vadd.f32 %v104_v21, %v61_v10  ;;  %p292_p1 = scmp.ne.s32.totalorder %s216_s2, %s291_s28  ;;  %p297_p3 = scmp.lt.s32.totalorder %s291_s28, %s291_s28 }
  0x2c   :  { %v94_v28 = vrot.slane %v93_v20, 2  ;;  %v65_v30 = vadd.f32 %v64_v22, %v63_v14  ;;  %v71_v31 = vadd.f32 %v70_v23, %v69_v15  ;;  %v100_v33 = vrot.slane %v99_v25, 2 }
  0x2d   :  { %v77_v32 = vadd.f32 %v76_v24, %v75_v16  ;;  %v83_v34 = vadd.f32 %v82_v26, %v81_v18  ;;  %v89_v35 = vadd.f32 %v88_v27, %v87_v19  ;;  %v106_v37 = vrot.slane %v105_v29, 2  ;;  %p298_p4 = por %p297_p3, %p296_p2 }
  0x2e   :  { %v95_v36 = vadd.f32 %v94_v28, %v93_v20  ;;  %v66_v38 = vrot.slane %v65_v30, 1  ;;  %v72_v39 = vrot.slane %v71_v31, 1  ;;  %v101_v41 = vadd.f32 %v100_v33, %v99_v25 }
  0x2f   :  { %v78_v40 = vrot.slane %v77_v32, 1  ;;  %v84_v42 = vrot.slane %v83_v34, 1  ;;  %v90_v43 = vrot.slane %v89_v35, 1  ;;  %v107_v45 = vadd.f32 %v106_v37, %v105_v29  ;;  %p299_p5 = pnand %p298_p4, %p292_p1 }
  0x30   :  { %v96_v44 = vrot.slane %v95_v36, 1  ;;  %v352_v49 = vadd.f32 %v66_v38, %v65_v30  ;;  %v354_v50 = vadd.f32 %v72_v39, %v71_v31  ;;  %v102_v52 = vrot.slane %v101_v41, 1 }
  0x31   :  { %v356_v51 = vadd.f32 %v78_v40, %v77_v32  ;;  %v85_v56 = vadd.f32 %v84_v42, %v83_v34  ;;  %v91_v57 = vadd.f32 %v90_v43, %v89_v35  ;;  %v108_v59 = vrot.slane %v107_v45, 1 }
  0x32   :  { %v97_v58 = vadd.f32 %v96_v44, %v95_v36  ;;  %v103_v61 = vadd.f32 %v102_v52, %v101_v41  ;;  %v118_v63 = vrot.slane %v110_v46, 4  ;;  %v124_v0 = vrot.slane %v111_v47, 4 }
  0x33   :  { %v130_v1 = vrot.slane %v112_v48, 4  ;;  %v109_v2 = vadd.f32 %v108_v59, %v107_v45  ;;  %v136_v3 = vrot.slane %v113_v53, 4  ;;  %v142_v4 = vrot.slane %v114_v54, 4 }
  0x34   :  { %v148_v5 = vrot.slane %v115_v55, 4  ;;  %v119_v6 = vadd.f32 %v118_v63, %v110_v46  ;;  %v125_v7 = vadd.f32 %v124_v0, %v111_v47  ;;  %v154_v9 = vrot.slane %v116_v60, 4 }
  0x35   :  { %v131_v8 = vadd.f32 %v130_v1, %v112_v48  ;;  %v137_v10 = vadd.f32 %v136_v3, %v113_v53  ;;  %v143_v11 = vadd.f32 %v142_v4, %v114_v54  ;;  %v160_v13 = vrot.slane %v117_v62, 4 }
  0x36   :  { %v149_v12 = vadd.f32 %v148_v5, %v115_v55  ;;  %v120_v14 = vrot.slane %v119_v6, 2  ;;  %v126_v15 = vrot.slane %v125_v7, 2  ;;  %v155_v17 = vadd.f32 %v154_v9, %v116_v60 }
  0x37   :  { %v132_v16 = vrot.slane %v131_v8, 2  ;;  %v138_v18 = vrot.slane %v137_v10, 2  ;;  %v144_v19 = vrot.slane %v143_v11, 2  ;;  %v161_v21 = vadd.f32 %v160_v13, %v117_v62 }
  0x38   :  { %v150_v20 = vrot.slane %v149_v12, 2  ;;  %v121_v22 = vadd.f32 %v120_v14, %v119_v6  ;;  %v127_v23 = vadd.f32 %v126_v15, %v125_v7  ;;  %v156_v25 = vrot.slane %v155_v17, 2 }
  0x39   :  { %v133_v24 = vadd.f32 %v132_v16, %v131_v8  ;;  %v139_v26 = vadd.f32 %v138_v18, %v137_v10  ;;  %v145_v27 = vadd.f32 %v144_v19, %v143_v11  ;;  %v162_v29 = vrot.slane %v161_v21, 2 }
  0x3a   :  { %v151_v28 = vadd.f32 %v150_v20, %v149_v12  ;;  %v122_v30 = vrot.slane %v121_v22, 1  ;;  %v128_v31 = vrot.slane %v127_v23, 1  ;;  %v157_v33 = vadd.f32 %v156_v25, %v155_v17 }
  0x3b   :  { %v134_v32 = vrot.slane %v133_v24, 1  ;;  %v140_v34 = vrot.slane %v139_v26, 1  ;;  %v146_v35 = vrot.slane %v145_v27, 1  ;;  %v163_v37 = vadd.f32 %v162_v29, %v161_v21 }
  0x3c   :  { %v152_v36 = vrot.slane %v151_v28, 1  ;;  %v123_v38 = vadd.f32 %v122_v30, %v121_v22  ;;  %v129_v39 = vadd.f32 %v128_v31, %v127_v23  ;;  %v158_v41 = vrot.slane %v157_v33, 1 }
  0x3d   :  { %v135_v40 = vadd.f32 %v134_v32, %v133_v24  ;;  %v141_v42 = vadd.f32 %v140_v34, %v139_v26  ;;  %v147_v43 = vadd.f32 %v146_v35, %v145_v27  ;;  %v164_v45 = vrot.slane %v163_v37, 1 }
  0x3e   :  { %v153_v44 = vadd.f32 %v152_v36, %v151_v28  ;;  %v159_v46 = vadd.f32 %v158_v41, %v157_v33  ;;  %v166_v47 = vadd.f32 %v123_v38, %v352_v49  ;;  %v167_v48 = vadd.f32 %v129_v39, %v354_v50 }
  0x3f   :  { %v168_v52 = vadd.f32 %v135_v40, %v356_v51  ;;  %v165_v53 = vadd.f32 %v164_v45, %v163_v37  ;;  %v169_v54 = vadd.f32 %v141_v42, %v85_v56  ;;  %v170_v55 = vadd.f32 %v147_v43, %v91_v57 }
  0x40   :  { %v171_v59 = vadd.f32 %v153_v44, %v97_v58  ;;  %v172_v60 = vadd.f32 %v159_v46, %v103_v61  ;;  %v174_v62 = vmul.f32 0.0625, %v166_v47  ;;  %v175_v63 = vmul.f32 0.0625, %v167_v48  ;;  %v182_v58 = vld [vmem:[#allocation2] sm:$0xff] }
  0x41   :  { %v176_v0 = vmul.f32 0.0625, %v168_v52  ;;  %v173_v1 = vadd.f32 %v165_v53, %v109_v2  ;;  %v177_v3 = vmul.f32 0.0625, %v169_v54  ;;  %v178_v4 = vmul.f32 0.0625, %v170_v55 }
  0x42   :  { %v179_v5 = vmul.f32 0.0625, %v171_v59  ;;  %v192_v6 = vsel %vm191_vm0, %v175_v63, %v174_v62  ;;  %vm197_vm3 = vcmask 1044484   ;;  %v180_v49 = vmul.f32 0.0625, %v172_v60 }
  0x43   :  { %v194_v50 = vsel %vm193_vm1, %v176_v0, %v192_v6  ;;  %vm199_vm4 = vcmask 1045509   ;;  %v181_v51 = vmul.f32 0.0625, %v173_v1  ;;  %vm201_vm5 = vcmask 1046534  }
  0x44   :  { %v196_v56 = vsel %vm195_vm2, %v177_v3, %v194_v50  ;;  %vm203_vm6 = vcmask 1047559  }
  0x45   :  { %v198_v57 = vsel %vm197_vm3, %v178_v4, %v196_v56 }
  0x46   :  { %v200_v61 = vsel %vm199_vm4, %v179_v5, %v198_v57 }
  0x47   :  { %v202_v7 = vsel %vm201_vm5, %v180_v49, %v200_v61 }
  0x48   :  { %v204_v2 = vsel %vm203_vm6, %v181_v51, %v202_v7 }
  0x49   :  { %v206_v8 = vadd.f32 %v204_v2, %v182_v58 }
  0x4b   :  { %v207_v9 = vmax.f32 %v206_v8, 0.0 }
  0x4d   :  { %208 = vst [vmem:[#allocation8] sm:$0xff] %v207_v9 }
  0x4e   :  { %302 = shalt.err (!%p299_p5)
}
  0x4f   :  { %218 = dma.vmem_to_hbm [thread:$0]  %s216_s2, 128, %s369_s3, [#allocation4]  }
  0x50   :  { %315 = dma.done.wait [#allocation4], 128  }
  0x51   :  { %316 = vsyncadd [#allocation4], 4294967168 }
  0x52   :  { %222 = vsyncpa [#allocation3], 1 }
  0x53   :  { %223 = vsyncpa [#allocation6], 1 }
  0x54   :  { %224 = vsyncpa [#allocation4], 1 }

</bundles_post_ra>
